<compile_context>
chip_gen: v7x
topology: tpu7x:2x2x1
jax: 0.10.0
libtpu: 0.0.40
codegen_flags: <defaults>
</compile_context>

<pallas_src>
import jax
import jax.numpy as jnp
from jax import lax
from jax.experimental import pallas as pl
from jax.experimental.pallas import tpu as pltpu

BN_EPS = 1e-5           # nn.BatchNorm1d default eps
LEAKY_SLOPE = 0.01      # nn.LeakyReLU default negative_slope
COMPUTE_DTYPE = jnp.bfloat16   # MXU input dtype (f32 accumulation everywhere)


def _round_up(v, m):
    return ((v + m - 1) // m) * m


def _pick_tk(k_dim):
    """K-tile for the trunk Linear; falls back to a single step for odd sizes."""
    for tk in (512, 256, 128):
        if k_dim % tk == 0:
            return tk
    return k_dim


def _vmem_limit_bytes():
    # ~75% of physical VMEM, capped: v5e/v6e (128 MiB) -> 96 MiB, v7x (64 MiB) -> 48 MiB.
    try:
        cap = int(pltpu.get_tpu_info().vmem_capacity_bytes)
    except Exception:
        cap = 64 * 1024 * 1024   # conservative default (v7x per-TC)
    return min((cap * 3) // 4, 100 * 1024 * 1024)


def _netwrapper_kernel(x_ref, w0_ref, b0_ref, w1p_ref, b1p_ref,
                       gamma_ref, beta_ref, wp2_ref, bp2_ref,
                       out_ref, h_acc):
    k = pl.program_id(0)

    # ---- backbone trunk (children[0]) Linear, K-tiled: f32 VMEM accumulator ----
    @pl.when(k == 0)
    def _():
        h_acc[...] = jnp.zeros_like(h_acc)

    h_acc[...] += jnp.dot(x_ref[...], w0_ref[...],
                          preferred_element_type=jnp.float32)

    # ---- epilogue on the last K step: everything stays in VMEM ----
    @pl.when(k == pl.num_programs(0) - 1)
    def _():
        h = jnp.maximum(h_acc[...] + b0_ref[...], 0.0)                 # trunk ReLU (N, 128)

        # hooked Linear (children[-2]) folded into projector Linear 1:
        #   z = rep @ wp1 + bp1 = h @ (w1 @ wp1) + (b1 @ wp1 + bp1)
        # (flatten() of the 2-D representation is a no-op; head children[-1] discarded.)
        z = jnp.dot(h.astype(COMPUTE_DTYPE), w1p_ref[...],
                    preferred_element_type=jnp.float32) + b1p_ref[...]  # (N, Hp)

        # BatchNorm1d, training mode (batch mean, biased variance) — all f32.
        mean = jnp.mean(z, axis=0, keepdims=True)
        var = jnp.mean((z - mean) * (z - mean), axis=0, keepdims=True)
        z_bn = (z - mean) * lax.rsqrt(var + BN_EPS) * gamma_ref[...] + beta_ref[...]

        act = jnp.where(z_bn >= 0.0, z_bn, LEAKY_SLOPE * z_bn)          # LeakyReLU

        # projector Linear 2 into a lane-dense padded slab (padded cols are exactly 0).
        proj = jnp.dot(act.astype(COMPUTE_DTYPE), wp2_ref[...],
                       preferred_element_type=jnp.float32) + bp2_ref[...]
        out_ref[...] = proj.astype(out_ref.dtype)


def netwrapper_forward(x, params):
    """NetWrapper(net, projection_size, projection_hidden_size, layer=-2).forward(x)."""
    (w0, b0, w1, b1, wp1, bp1, gamma, beta, wp2, bp2) = params
    n = x.shape[0]
    proj_size = wp2.shape[1]

    # flatten(x): metadata-only reshape; flattened input is lane-dense (mult of 128).
    x2d = x.reshape(n, -1)
    in_dim = x2d.shape[1]
    trunk_dim = w0.shape[1]
    hp_dim = wp1.shape[1]

    # ---- parameter prep (cheap, once per call) ----
    # Fold hooked Linear into projector Linear 1 (representation is not an output here).
    w1p = jnp.dot(w1, wp1, precision=lax.Precision.HIGHEST)
    b1p = jnp.dot(b1, wp1, precision=lax.Precision.HIGHEST) + bp1
    # Pad projection columns to a multiple of 128 for unmasked (lane-dense) stores.
    p_pad = _round_up(proj_size, 128)
    wp2p = jnp.pad(wp2, ((0, 0), (0, p_pad - proj_size)))
    bp2p = jnp.pad(bp2, ((0, 0), (0, p_pad - proj_size)))

    # bf16 MXU inputs (weights/activations); biases, BN params stay f32.
    xb = x2d.astype(COMPUTE_DTYPE)
    w0b = w0.astype(COMPUTE_DTYPE)
    w1pb = w1p.astype(COMPUTE_DTYPE)
    wp2b = wp2p.astype(COMPUTE_DTYPE)

    tk = _pick_tk(in_dim)
    grid = (in_dim // tk,)

    operands = (xb, w0b, b0, w1pb, b1p, gamma, beta, wp2b, bp2p)
    const_map = lambda k: (0, 0)

    in_specs = [
        pl.BlockSpec((n, tk), lambda k: (0, k)),          # x: streamed over K
        pl.BlockSpec((tk, trunk_dim), lambda k: (k, 0)),  # w0: streamed over K
        pl.BlockSpec(b0.shape, const_map),                # resident (fetched once)
        pl.BlockSpec(w1pb.shape, const_map),
        pl.BlockSpec(b1p.shape, const_map),
        pl.BlockSpec(gamma.shape, const_map),
        pl.BlockSpec(beta.shape, const_map),
        pl.BlockSpec(wp2b.shape, const_map),
        pl.BlockSpec(bp2p.shape, const_map),
    ]
    out_spec = pl.BlockSpec((n, p_pad), const_map)

    flops = 2 * n * (in_dim * trunk_dim + trunk_dim * hp_dim + hp_dim * p_pad)
    bytes_accessed = sum(int(a.size) * a.dtype.itemsize for a in operands) + n * p_pad * 4

    out_padded = pl.pallas_call(
        _netwrapper_kernel,
        out_shape=jax.ShapeDtypeStruct((n, p_pad), x.dtype),
        grid_spec=pltpu.PrefetchScalarGridSpec(
            num_scalar_prefetch=0,
            grid=grid,
            in_specs=in_specs,
            out_specs=out_spec,
            scratch_shapes=[pltpu.VMEM((n, trunk_dim), jnp.float32)],  # trunk accumulator
        ),
        compiler_params=pltpu.CompilerParams(
            dimension_semantics=("arbitrary",),           # K reduction with carried acc
            vmem_limit_bytes=_vmem_limit_bytes(),
        ),
        cost_estimate=pl.CostEstimate(
            flops=flops, transcendentals=hp_dim, bytes_accessed=bytes_accessed),
    )(*operands)

    return out_padded[:, :proj_size]


def init_params(key, in_dim, trunk_dim, repr_dim, proj_hidden, proj_size):
    """Deterministic float32 parameters for backbone + projector."""
    ks = jax.random.split(key, 8)

    def linear(kw, kb, fan_in, fan_out):
        w = jax.random.normal(kw, (fan_in, fan_out), jnp.float32) / jnp.sqrt(fan_in)
        b = 0.1 * jax.random.normal(kb, (1, fan_out), jnp.float32)
        return w, b

    w0, b0 = linear(ks[0], ks[1], in_dim, trunk_dim)          # backbone trunk
    w1, b1 = linear(ks[2], ks[3], trunk_dim, repr_dim)        # hooked layer (-2)
    wp1, bp1 = linear(ks[4], ks[5], repr_dim, proj_hidden)    # projector Linear 1
    wp2, bp2 = linear(ks[6], ks[7], proj_hidden, proj_size)   # projector Linear 2
    gamma = jnp.ones((1, proj_hidden), jnp.float32)           # BatchNorm1d weight
    beta = jnp.zeros((1, proj_hidden), jnp.float32)           # BatchNorm1d bias
    return (w0, b0, w1, b1, wp1, bp1, gamma, beta, wp2, bp2)


def _reference(x, params):
    """Pure-JAX f32 mirror of NetWrapper.forward (training-mode BatchNorm1d)."""
    (w0, b0, w1, b1, wp1, bp1, gamma, beta, wp2, bp2) = params
    hp_ = lambda a, b: jnp.dot(a, b, precision=lax.Precision.HIGHEST)
    xf = x.reshape(x.shape[0], -1)
    h = jnp.maximum(hp_(xf, w0) + b0, 0.0)
    rep = hp_(h, w1) + b1                       # flatten() is a no-op on 2-D
    z = hp_(rep, wp1) + bp1
    mean = jnp.mean(z, axis=0, keepdims=True)
    var = jnp.mean((z - mean) ** 2, axis=0, keepdims=True)
    z_bn = (z - mean) / jnp.sqrt(var + BN_EPS) * gamma + beta
    act = jnp.where(z_bn >= 0.0, z_bn, LEAKY_SLOPE * z_bn)
    return hp_(act, wp2) + bp2


if __name__ == "__main__":
    key = jax.random.PRNGKey(0)
    k_x, k_p = jax.random.split(key)

    # Batch is a sublane multiple (both BYOL augmented views batched together).
    N, C, H, W = 8, 4, 16, 16
    IN_DIM = C * H * W          # 1024 (= 8 * 128, lane-dense; K-tiled in the kernel)
    TRUNK_DIM = 128
    REPR_DIM = 128              # representation dim (projector input dim)
    PROJ_HIDDEN = 32            # projection_hidden_size (small test value)
    PROJ_SIZE = 16              # projection_size (padded to 128 lanes inside the wrapper)

    x = jax.random.normal(k_x, (N, C, H, W), dtype=jnp.float32)
    params = init_params(k_p, IN_DIM, TRUNK_DIM, REPR_DIM, PROJ_HIDDEN, PROJ_SIZE)

    out = jax.block_until_ready(netwrapper_forward(x, params))

    ref = _reference(x, params)
    assert out.shape == (N, PROJ_SIZE)
    err = float(jnp.max(jnp.abs(out - ref)))
    # bf16 MXU inputs with f32 accumulation vs the f32 HIGHEST reference.
    tol = 5e-2 + 2e-2 * float(jnp.max(jnp.abs(ref)))
    assert err < tol, f"max abs err {err} (tol {tol})"

    print("KERNEL_OK")
</pallas_src>

<mosaic_0001>
module attributes {stable_mosaic.version = 11 : i64} {
  func.func @_netwrapper_kernel(%arg0: i32, %arg1: memref<8x512xbf16, #tpu.memory_space<vmem>>, %arg2: memref<512x128xbf16, #tpu.memory_space<vmem>>, %arg3: memref<1x128xf32, #tpu.memory_space<vmem>>, %arg4: memref<128x32xbf16, #tpu.memory_space<vmem>>, %arg5: memref<1x32xf32, #tpu.memory_space<vmem>>, %arg6: memref<1x32xf32, #tpu.memory_space<vmem>>, %arg7: memref<1x32xf32, #tpu.memory_space<vmem>>, %arg8: memref<32x128xbf16, #tpu.memory_space<vmem>>, %arg9: memref<1x128xf32, #tpu.memory_space<vmem>>, %arg10: memref<8x128xf32, #tpu.memory_space<vmem>>, %arg11: memref<8x128xf32, #tpu.memory_space<vmem>>) attributes {dimension_semantics = [#tpu.dimension_semantics<arbitrary>], iteration_bounds = array<i64: 2>, scalar_prefetch = 0 : i64, scratch_operands = 1 : i64, tpu.core_type = #tpu.core_type<tc>, window_params = [{transform_indices = @transform_0, window_bounds = array<i64: 8, 512>}, {transform_indices = @transform_1, window_bounds = array<i64: 512, 128>}, {pipeline_mode = #tpu.pipeline_mode<synchronous>, transform_indices = @transform_2, window_bounds = array<i64: 1, 128>}, {pipeline_mode = #tpu.pipeline_mode<synchronous>, transform_indices = @transform_3, window_bounds = array<i64: 128, 32>}, {pipeline_mode = #tpu.pipeline_mode<synchronous>, transform_indices = @transform_4, window_bounds = array<i64: 1, 32>}, {pipeline_mode = #tpu.pipeline_mode<synchronous>, transform_indices = @transform_5, window_bounds = array<i64: 1, 32>}, {pipeline_mode = #tpu.pipeline_mode<synchronous>, transform_indices = @transform_6, window_bounds = array<i64: 1, 32>}, {pipeline_mode = #tpu.pipeline_mode<synchronous>, transform_indices = @transform_7, window_bounds = array<i64: 32, 128>}, {pipeline_mode = #tpu.pipeline_mode<synchronous>, transform_indices = @transform_8, window_bounds = array<i64: 1, 128>}, {pipeline_mode = #tpu.pipeline_mode<synchronous>, transform_indices = @transform_9, window_bounds = array<i64: 8, 128>}]} {
    %c0_i32 = arith.constant 0 : i32
    %0 = arith.cmpi eq, %arg0, %c0_i32 : i32
    %1 = arith.extui %0 : i1 to i32
    %c0_i32_0 = arith.constant 0 : i32
    %2 = arith.cmpi ne, %1, %c0_i32_0 : i32
    scf.if %2 {
      %cst_9 = arith.constant 0.000000e+00 : f32
      %12 = vector.broadcast %cst_9 : f32 to vector<8x128xf32>
      %c0_10 = arith.constant 0 : index
      %c0_11 = arith.constant 0 : index
      %13 = vector.load %arg11[%c0_10, %c0_11] : memref<8x128xf32, #tpu.memory_space<vmem>>, vector<8x128xf32>
      tpu.vector_store %arg11[%c0_10, %c0_11], %12 {strides = array<i32>} : memref<8x128xf32, #tpu.memory_space<vmem>>, vector<8x128xf32>,
    } else {
    }
    %c0 = arith.constant 0 : index
    %c0_1 = arith.constant 0 : index
    %3 = vector.load %arg11[%c0, %c0_1] : memref<8x128xf32, #tpu.memory_space<vmem>>, vector<8x128xf32>
    %c0_2 = arith.constant 0 : index
    %c0_3 = arith.constant 0 : index
    %4 = vector.load %arg1[%c0_2, %c0_3] : memref<8x512xbf16, #tpu.memory_space<vmem>>, vector<8x512xbf16>
    %c0_4 = arith.constant 0 : index
    %c0_5 = arith.constant 0 : index
    %5 = vector.load %arg2[%c0_4, %c0_5] : memref<512x128xbf16, #tpu.memory_space<vmem>>, vector<512x128xbf16>
    %cst = arith.constant dense<0.000000e+00> : vector<8x128xf32>
    %6 = tpu.matmul %4, %5, %cst {dimension_numbers = #tpu.dot_dimension_numbers<[1], [0], [0], [1], [0, 0, 1, 1], [], []>} : vector<8x512xbf16>, vector<512x128xbf16>, vector<8x128xf32> -> vector<8x128xf32>
    %7 = arith.addf %3, %6 : vector<8x128xf32>
    %c0_6 = arith.constant 0 : index
    %c0_7 = arith.constant 0 : index
    %8 = vector.load %arg11[%c0_6, %c0_7] : memref<8x128xf32, #tpu.memory_space<vmem>>, vector<8x128xf32>
    tpu.vector_store %arg11[%c0_6, %c0_7], %7 {strides = array<i32>} : memref<8x128xf32, #tpu.memory_space<vmem>>, vector<8x128xf32>,
    %c1_i32 = arith.constant 1 : i32
    %9 = arith.cmpi eq, %arg0, %c1_i32 : i32
    %10 = arith.extui %9 : i1 to i32
    %c0_i32_8 = arith.constant 0 : i32
    %11 = arith.cmpi ne, %10, %c0_i32_8 : i32
    scf.if %11 {
      %c0_9 = arith.constant 0 : index
      %c0_10 = arith.constant 0 : index
      %12 = vector.load %arg11[%c0_9, %c0_10] : memref<8x128xf32, #tpu.memory_space<vmem>>, vector<8x128xf32>
      %c0_11 = arith.constant 0 : index
      %c0_12 = arith.constant 0 : index
      %13 = vector.load %arg3[%c0_11, %c0_12] : memref<1x128xf32, #tpu.memory_space<vmem>>, vector<1x128xf32>
      %14 = vector.broadcast %13 : vector<1x128xf32> to vector<8x128xf32>
      %15 = arith.addf %12, %14 : vector<8x128xf32>
      %cst_13 = arith.constant 0.000000e+00 : f32
      %16 = vector.broadcast %cst_13 : f32 to vector<8x128xf32>
      %17 = arith.maximumf %15, %16 : vector<8x128xf32>
      %18 = arith.truncf %17 : vector<8x128xf32> to vector<8x128xbf16>
      %c0_14 = arith.constant 0 : index
      %c0_15 = arith.constant 0 : index
      %19 = vector.load %arg4[%c0_14, %c0_15] : memref<128x32xbf16, #tpu.memory_space<vmem>>, vector<128x32xbf16>
      %cst_16 = arith.constant dense<0.000000e+00> : vector<8x32xf32>
      %20 = tpu.matmul %18, %19, %cst_16 {dimension_numbers = #tpu.dot_dimension_numbers<[1], [0], [0], [1], [0, 0, 1, 1], [], []>} : vector<8x128xbf16>, vector<128x32xbf16>, vector<8x32xf32> -> vector<8x32xf32>
      %c0_17 = arith.constant 0 : index
      %c0_18 = arith.constant 0 : index
      %21 = vector.load %arg5[%c0_17, %c0_18] : memref<1x32xf32, #tpu.memory_space<vmem>>, vector<1x32xf32>
      %22 = vector.broadcast %21 : vector<1x32xf32> to vector<8x32xf32>
      %23 = arith.addf %20, %22 : vector<8x32xf32>
      %cst_19 = arith.constant dense<0.000000e+00> : vector<32xf32>
      %24 = vector.multi_reduction <add>, %23, %cst_19 [0] : vector<8x32xf32> to vector<32xf32>
      %25 = vector.shape_cast %24 : vector<32xf32> to vector<1x32xf32>
      %cst_20 = arith.constant 8.000000e+00 : f32
      %26 = vector.broadcast %cst_20 : f32 to vector<1x32xf32>
      %27 = arith.divf %25, %26 : vector<1x32xf32>
      %28 = vector.broadcast %27 : vector<1x32xf32> to vector<8x32xf32>
      %29 = arith.subf %23, %28 : vector<8x32xf32>
      %30 = vector.broadcast %27 : vector<1x32xf32> to vector<8x32xf32>
      %31 = arith.subf %23, %30 : vector<8x32xf32>
      %32 = arith.mulf %29, %31 : vector<8x32xf32>
      %cst_21 = arith.constant dense<0.000000e+00> : vector<32xf32>
      %33 = vector.multi_reduction <add>, %32, %cst_21 [0] : vector<8x32xf32> to vector<32xf32>
      %34 = vector.shape_cast %33 : vector<32xf32> to vector<1x32xf32>
      %cst_22 = arith.constant 8.000000e+00 : f32
      %35 = vector.broadcast %cst_22 : f32 to vector<1x32xf32>
      %36 = arith.divf %34, %35 : vector<1x32xf32>
      %37 = vector.broadcast %27 : vector<1x32xf32> to vector<8x32xf32>
      %38 = arith.subf %23, %37 : vector<8x32xf32>
      %cst_23 = arith.constant 9.99999974E-6 : f32
      %39 = vector.broadcast %cst_23 : f32 to vector<1x32xf32>
      %40 = arith.addf %36, %39 : vector<1x32xf32>
      %41 = math.rsqrt %40 : vector<1x32xf32>
      %42 = vector.broadcast %41 : vector<1x32xf32> to vector<8x32xf32>
      %43 = arith.mulf %38, %42 : vector<8x32xf32>
      %c0_24 = arith.constant 0 : index
      %c0_25 = arith.constant 0 : index
      %44 = vector.load %arg6[%c0_24, %c0_25] : memref<1x32xf32, #tpu.memory_space<vmem>>, vector<1x32xf32>
      %45 = vector.broadcast %44 : vector<1x32xf32> to vector<8x32xf32>
      %46 = arith.mulf %43, %45 : vector<8x32xf32>
      %c0_26 = arith.constant 0 : index
      %c0_27 = arith.constant 0 : index
      %47 = vector.load %arg7[%c0_26, %c0_27] : memref<1x32xf32, #tpu.memory_space<vmem>>, vector<1x32xf32>
      %48 = vector.broadcast %47 : vector<1x32xf32> to vector<8x32xf32>
      %49 = arith.addf %46, %48 : vector<8x32xf32>
      %cst_28 = arith.constant 0.000000e+00 : f32
      %50 = vector.broadcast %cst_28 : f32 to vector<8x32xf32>
      %51 = arith.cmpf oge, %49, %50 : vector<8x32xf32>
      %cst_29 = arith.constant 0.00999999977 : f32
      %52 = vector.broadcast %cst_29 : f32 to vector<8x32xf32>
      %53 = arith.mulf %52, %49 : vector<8x32xf32>
      %54 = arith.select %51, %49, %53 : vector<8x32xi1>, vector<8x32xf32>
      %55 = arith.truncf %54 : vector<8x32xf32> to vector<8x32xbf16>
      %c0_30 = arith.constant 0 : index
      %c0_31 = arith.constant 0 : index
      %56 = vector.load %arg8[%c0_30, %c0_31] : memref<32x128xbf16, #tpu.memory_space<vmem>>, vector<32x128xbf16>
      %cst_32 = arith.constant dense<0.000000e+00> : vector<8x128xf32>
      %57 = tpu.matmul %55, %56, %cst_32 {dimension_numbers = #tpu.dot_dimension_numbers<[1], [0], [0], [1], [0, 0, 1, 1], [], []>} : vector<8x32xbf16>, vector<32x128xbf16>, vector<8x128xf32> -> vector<8x128xf32>
      %c0_33 = arith.constant 0 : index
      %c0_34 = arith.constant 0 : index
      %58 = vector.load %arg9[%c0_33, %c0_34] : memref<1x128xf32, #tpu.memory_space<vmem>>, vector<1x128xf32>
      %59 = vector.broadcast %58 : vector<1x128xf32> to vector<8x128xf32>
      %60 = arith.addf %57, %59 : vector<8x128xf32>
      %c0_35 = arith.constant 0 : index
      %c0_36 = arith.constant 0 : index
      %61 = vector.load %arg10[%c0_35, %c0_36] : memref<8x128xf32, #tpu.memory_space<vmem>>, vector<8x128xf32>
      tpu.vector_store %arg10[%c0_35, %c0_36], %60 {strides = array<i32>} : memref<8x128xf32, #tpu.memory_space<vmem>>, vector<8x128xf32>,
    } else {
    }
    return
  }
  func.func @transform_0(%arg0: i32) -> (i32, i32) {
    %c0_i32 = arith.constant 0 : i32
    %c0_i32_0 = arith.constant 0 : i32
    return %c0_i32, %arg0 : i32, i32
  }
  func.func @transform_1(%arg0: i32) -> (i32, i32) {
    %c0_i32 = arith.constant 0 : i32
    %c0_i32_0 = arith.constant 0 : i32
    return %arg0, %c0_i32 : i32, i32
  }
  func.func @transform_2(%arg0: i32) -> (i32, i32) {
    %c0_i32 = arith.constant 0 : i32
    %c0_i32_0 = arith.constant 0 : i32
    %c0_i32_1 = arith.constant 0 : i32
    return %c0_i32, %c0_i32_0 : i32, i32
  }
  func.func @transform_3(%arg0: i32) -> (i32, i32) {
    %c0_i32 = arith.constant 0 : i32
    %c0_i32_0 = arith.constant 0 : i32
    %c0_i32_1 = arith.constant 0 : i32
    return %c0_i32, %c0_i32_0 : i32, i32
  }
  func.func @transform_4(%arg0: i32) -> (i32, i32) {
    %c0_i32 = arith.constant 0 : i32
    %c0_i32_0 = arith.constant 0 : i32
    %c0_i32_1 = arith.constant 0 : i32
    return %c0_i32, %c0_i32_0 : i32, i32
  }
  func.func @transform_5(%arg0: i32) -> (i32, i32) {
    %c0_i32 = arith.constant 0 : i32
    %c0_i32_0 = arith.constant 0 : i32
    %c0_i32_1 = arith.constant 0 : i32
    return %c0_i32, %c0_i32_0 : i32, i32
  }
  func.func @transform_6(%arg0: i32) -> (i32, i32) {
    %c0_i32 = arith.constant 0 : i32
    %c0_i32_0 = arith.constant 0 : i32
    %c0_i32_1 = arith.constant 0 : i32
    return %c0_i32, %c0_i32_0 : i32, i32
  }
  func.func @transform_7(%arg0: i32) -> (i32, i32) {
    %c0_i32 = arith.constant 0 : i32
    %c0_i32_0 = arith.constant 0 : i32
    %c0_i32_1 = arith.constant 0 : i32
    return %c0_i32, %c0_i32_0 : i32, i32
  }
  func.func @transform_8(%arg0: i32) -> (i32, i32) {
    %c0_i32 = arith.constant 0 : i32
    %c0_i32_0 = arith.constant 0 : i32
    %c0_i32_1 = arith.constant 0 : i32
    return %c0_i32, %c0_i32_0 : i32, i32
  }
  func.func @transform_9(%arg0: i32) -> (i32, i32) {
    %c0_i32 = arith.constant 0 : i32
    %c0_i32_0 = arith.constant 0 : i32
    %c0_i32_1 = arith.constant 0 : i32
    return %c0_i32, %c0_i32_0 : i32, i32
  }
}

</mosaic_0001>

<bundles_post_ra>
// kernel: tpu_custom_call.1
= control target key start
LH: loop header
LB: loop body
LE: loop exit
PB: predicated region body
PF: predicated region fallthrough
CT: control target
= control target key end

     0   :  { %14 = vsyncpa [#allocation4], 0  ;;  %s1651_s0 = inlined_call_operand.vmem [shape: bf16[8,1024], index: 0, kind: input, shape index: {}]   ;;  %s1652_s1 = inlined_call_operand.hbm [shape: bf16[1024,128], index: 1, kind: input, shape index: {}]   ;;  %s1653_s2 = inlined_call_operand.vmem [shape: f32[1,128], index: 2, kind: input, shape index: {}]   ;;  %s1654_s3 = inlined_call_operand.vmem [shape: bf16[128,32], index: 3, kind: input, shape index: {}]   ;;  %s1655_s4 = inlined_call_operand.vmem [shape: f32[1,32], index: 4, kind: input, shape index: {}]   ;;  %s1656_s5 = inlined_call_operand.vmem [shape: f32[1,32], index: 5, kind: input, shape index: {}]   ;;  %s1657_s6 = inlined_call_operand.vmem [shape: f32[1,32], index: 6, kind: input, shape index: {}]   ;;  %s1658_s7 = inlined_call_operand.vmem [shape: bf16[32,128], index: 7, kind: input, shape index: {}]   ;;  %s1659_s8 = inlined_call_operand.vmem [shape: f32[1,128], index: 8, kind: input, shape index: {}]   ;;  %s1660_s9 = inlined_call_operand.hbm [shape: f32[8,128], index: 9, kind: output, shape index: {}]  }
   0x1   :  { %16 = vsyncpa [#allocation4 + $0x1], 0 }
   0x2   :  { %17 = vsyncpa [#allocation5], 0  ;;  %s1433_s30 = smov 0   ;;  %s1435_s10 = smov 0  }
   0x3   :  { %s1437_s11 = smov 0   ;;  %s1439_s12 = smov 0  }
   0x4 LB: > { %s1452_s13 = sadd.s32 4294967295, %s1374_s12   ;;  %s1455_s14 = sadd.s32 1, %s1374_s12   ;;  %s1374_s12 = sphi %s1439_s12, %s1667_s12   ;;  %s1370_s11 = sphi %s1437_s11, %s1666_s11   ;;  %s1366_s10 = sphi %s1435_s10, %s1665_s10   ;;  %s1362_s30 = sphi %s1433_s30, %s1664_s30  }
   0x5   : > { %s53_s15 = ssub.s32 %s1374_s12, %s1455_s14  ;;  %s56_s16 = sadd.s32 1, %s1370_s11 }
   0x6   : > { %p54_p0 = scmp.eq.s32.totalorder %s53_s15, 0  ;;  %p63_p1 = scmp.ne.s32.totalorder %s1370_s11, %s1366_s10 }
   0x7   : > { %p64_p2 = scmp.eq.s32.totalorder %s1374_s12, 0  ;;  %p69_p3 = scmp.ne.s32.totalorder %s1366_s10, %s1362_s30 }
   0x8   : > { %s1465_s17 = scalar_select %p54_p0, %s1370_s11, %s56_s16  }
   0x9   : > { %p65_p4 = por %p64_p2, %p63_p1  ;;  %p70_p5 = scmp.eq.s32.totalorder %s1452_s13, 0 }
   0xa   : > { %p1191_p6 = scmp.lt.s32.totalorder %s1374_s12, 2  ;;  %s291_s19 = sand.u32 1, %s1370_s11  }
   0xb   : > { %p1469_p7 = por %p70_p5, %p69_p3  ;;  %s1031_s20 = sshll.u32 %s291_s19, 8 }
   0xc   : > { %s1096_s21 = sshll.u32 %s1374_s12, 12  ;;  %s295_s25 = scalar_lea.vmem [#allocation3], %s1031_s20 }
   0xd   : > { %s1478_s24 = scalar_lea.hbm %s1652_s1, %s1096_s21  ;;  %s302_s26 = sshll.u32 %s295_s25, 4  ;;  %s1480_s26 = int_to_ptr.vmem [resolvable:$true] %s302_s26 }
   0xe   : > { %p1482_p8 = pnand %p1191_p6, %p65_p4  ;;  %s1487_s28 = scalar_lea.sflag [#allocation4], %s291_s19 }
   0xf   : > { %s1280_s29 = scalar_lea.hbm %s1478_s24, 4096  ;;  %s1285_s16 = scalar_lea.hbm %s1652_s1, 8192 }
  0x10   : > { %p1281_p10 = scmp.ne.s32.totalorder %s1478_s24, %s1280_s29  ;;  %p1282_p11 = pneg %p1482_p8 }
  0x11   : > { %p1286_p0 = scmp.lt.u32.totalorder %s1478_s24, %s1652_s1  ;;  %p1287_p1 = scmp.lt.u32.totalorder %s1285_s16, %s1280_s29 }
  0x12   : > { %p1283_p12 = pnand %p1282_p11, %p1281_p10  ;;  %p1289_p3 = scmp.lt.u32.totalorder %s1280_s29, %s1478_s24 }
  0x13   : > { %p1288_p2 = por %p1287_p1, %p1286_p0 }
  0x14   : > { %p1284_p13 = pneg %p1283_p12 }
  0x15   : > { %p1290_p4 = por %p1289_p3, %p1288_p2 }
  0x17   : > { %p1291_p5 = pnand %p1290_p4, %p1284_p13 }
  0x19   : > { %1294 = shalt.err (!%p1291_p5)
}
  0x1a   : > { %s1295_s19 = scalar_lea.vmem %s1480_s26, 4096  ;;  %s1376_s22 = smov [#allocation3]  }
  0x1b   : > { %p1296_p6 = scmp.ne.s32.totalorder %s1480_s26, %s1295_s19  ;;  %s1300_s23 = sshll.u32 %s1376_s22, 4  ;;  %s1301_s23 = int_to_ptr.vmem [resolvable:$false] %s1300_s23 }
  0x1c   : > { %s1302_s25 = scalar_lea.vmem %s1301_s23, 8192  ;;  %p1303_p9 = scmp.lt.s32.totalorder %s1480_s26, %s1301_s23 }
  0x1d   : > { %p1298_p10 = pnand %p1296_p6, %p1282_p11  ;;  %p1304_p0 = scmp.lt.s32.totalorder %s1302_s25, %s1295_s19 }
  0x1f   : > { %p1299_p12 = pneg %p1298_p10  ;;  %p1305_p1 = por %p1304_p0, %p1303_p9 }
  0x21   : > { %p1306_p2 = pnand %p1305_p1, %p1299_p12 }
  0x23   : > { %1309 = shalt.err (!%p1306_p2)
}
  0x24   : > { %s1377_s29 = smov 64   ;;  %s1378_s30 = smov 4  }
  0x25   : > { %1190 = dma.hbm_to_vmem [thread:$0]  (!%p1482_p8), %s1478_s24, 4096, %s1480_s26, %s1487_s28, %s1377_s29, %s1377_s29, %s1378_s30  }
  0x26   : > { %p310_p11 = scmp.lt.s32.totalorder %s1374_s12, 3  ;;  %p1663_p13 = scmp.ge.s32.totalorder %s1374_s12, 1 }
  0x28   : > { %p311_p3 = pnand %p1663_p13, %p310_p11 }
  0x29   : > { %s316_s15 = sand.u32 (!%p311_p3), 1, %s1366_s10  }
  0x2a   : > { %314 = sbr.rel (%p311_p3) target bundleno = 839 (0x347), region = 56  ;;  %s1035_s16 = sshll.u32 (!%p311_p3), %s316_s15, 8 }
  0x2b   : > { %s317_s20 = scalar_lea.sflag (!%p311_p3), [#allocation4], %s316_s15  ;;  %s1519_s21 = scalar_lea.vmem (!%p311_p3), [#allocation3], %s1035_s16 }
  0x31   : > { %1353 = dma.done.wait (%p1469_p7), %s317_s20, 4096  }
  0x32   : > { %1355 = vsyncadd (%p1469_p7), %s317_s20, 4294963200  ;;  %s1036_s19 = sshll.u32 %s1452_s13, 2  ;;  %p1038_p8 = scmp.ne.s32.totalorder %s1452_s13, 0 }
  0x33   : > { %p356_p9 = scmp.lt.s32.totalorder %s1036_s19, 7  ;;  %v1379_v0 = vmov (!%p1038_p8), 0.0  }
  0x34   : > { %366 = sbr.rel (%p1038_p8) target bundleno = 59 (0x3b), region = 64  ;;  %367 = vst [vmem:[#allocation2] sm:$0xff] (!%p1038_p8), %v1379_v0 }
  0x35   : > { %s1669_s19 = smov (!%p356_p9, %s1036_s19), 7 }
  0x36   : > { %s1037_s24 = sshll.u32 %s1669_s19, 2 }
  0x37   : > { %s1529_s27 = scalar_lea.vmem %s1651_s0, %s1037_s24 }
  0x3b PF: > { %v1232_v1 = vld [vmem:[%s1519_s21 + $0x40] sm:$0xff]   ;;  %v1236_v5 = vld [vmem:[%s1519_s21 + $0x48] sm:$0xff]   ;;  %v1240_v9 = vld [vmem:[%s1519_s21 + $0x50] sm:$0xff]   ;;  %p1075_p7 = scmp.ne.s32.totalorder %s1452_s13, 1 }
  0x3c   : > { %v1233_v2 = vld [vmem:[%s1519_s21 + $0xc0] sm:$0xff]   ;;  %1097 = vmatprep.subr.bf16.mxu0 %v1232_v1  ;;  %v1237_v6 = vld [vmem:[%s1519_s21 + $0xc8] sm:$0xff]   ;;  %v1241_v10 = vld [vmem:[%s1519_s21 + $0xd0] sm:$0xff]   ;;  %v1380_v53 = vmov (!%p1075_p7), 0.0   ;;  %vm1381_vm0 = vmmov (!%p1075_p7), 0   ;;  %vm849_vm1 = vcmask (!%p1075_p7), 261120  }
  0x3d   : > { %v1234_v3 = vld [vmem:[%s1519_s21] sm:$0xff]   ;;  %1119 = vmatprep.subr.bf16.mxu1 %v1233_v2  ;;  %v1238_v7 = vld [vmem:[%s1519_s21 + $0x8] sm:$0xff]   ;;  %v1242_v11 = vld [vmem:[%s1519_s21 + $0x10] sm:$0xff]  }
  0x3e   : > { %v1235_v4 = vld [vmem:[%s1519_s21 + $0x80] sm:$0xff]   ;;  %1098 = vmatpush3.bf16.msra.mxu0 %v1234_v3  ;;  %v1239_v8 = vld [vmem:[%s1519_s21 + $0x88] sm:$0xff]   ;;  %v1243_v12 = vld [vmem:[%s1519_s21 + $0x90] sm:$0xff]  }
  0x3f   : > { %1120 = vmatpush3.bf16.msra.mxu1 %v1235_v4  ;;  %1099 = vmatprep.subr.bf16.mxu0 %v1236_v5  ;;  %v1244_v13 = vld [vmem:[%s1519_s21 + $0x58] sm:$0xff]   ;;  %v1248_v17 = vld [vmem:[%s1519_s21 + $0x60] sm:$0xff]   ;;  %v1252_v21 = vld [vmem:[%s1519_s21 + $0x68] sm:$0xff]  }
  0x40   : > { %1121 = vmatprep.subr.bf16.mxu1 %v1237_v6  ;;  %v1245_v14 = vld [vmem:[%s1519_s21 + $0xd8] sm:$0xff]   ;;  %v1249_v18 = vld [vmem:[%s1519_s21 + $0xe0] sm:$0xff]   ;;  %v1253_v22 = vld [vmem:[%s1519_s21 + $0xe8] sm:$0xff]  }
  0x41   : > { %v1246_v15 = vld [vmem:[%s1519_s21 + $0x18] sm:$0xff]   ;;  %v1250_v19 = vld [vmem:[%s1519_s21 + $0x20] sm:$0xff]   ;;  %v1254_v23 = vld [vmem:[%s1519_s21 + $0x28] sm:$0xff]  }
  0x42   : > { %1100 = vmatpush3.bf16.msra.mxu0 %v1238_v7  ;;  %v1247_v16 = vld [vmem:[%s1519_s21 + $0x98] sm:$0xff]   ;;  %v1251_v20 = vld [vmem:[%s1519_s21 + $0xa0] sm:$0xff]   ;;  %v1255_v24 = vld [vmem:[%s1519_s21 + $0xa8] sm:$0xff]  }
  0x43   : > { %1122 = vmatpush3.bf16.msra.mxu1 %v1239_v8  ;;  %1101 = vmatprep.subr.bf16.mxu0 %v1240_v9  ;;  %v1256_v25 = vld [vmem:[%s1519_s21 + $0x70] sm:$0xff]   ;;  %v1260_v29 = vld [vmem:[%s1519_s21 + $0x78] sm:$0xff]   ;;  %v370_v34 = vld [vmem:[%s1529_s27 + $0x8] sm:$0xff] }
  0x44   : > { %1123 = vmatprep.subr.bf16.mxu1 %v1241_v10  ;;  %v1257_v26 = vld [vmem:[%s1519_s21 + $0xf0] sm:$0xff]   ;;  %v1261_v30 = vld [vmem:[%s1519_s21 + $0xf8] sm:$0xff]   ;;  %v1041_v37 = vcombine.low %v370_v34, %v370_v34  ;;  %v1042_v38 = vcombine.high %v370_v34, %v370_v34  ;;  %v1269_v54 = vld [vmem:[%s1654_s3 + $0x8] sm:$0xff] (!%p1075_p7)  }
  0x45   : > { %v1258_v27 = vld [vmem:[%s1519_s21 + $0x30] sm:$0xff]   ;;  %v1262_v31 = vld [vmem:[%s1519_s21 + $0x38] sm:$0xff]   ;;  %v1270_v55 = vld [vmem:[%s1654_s3 + $0x10] sm:$0xff] (!%p1075_p7)  }
  0x46   : > { %1102 = vmatpush3.bf16.msra.mxu0 %v1242_v11  ;;  %v1259_v28 = vld [vmem:[%s1519_s21 + $0xb0] sm:$0xff]   ;;  %v1263_v32 = vld [vmem:[%s1519_s21 + $0xb8] sm:$0xff]   ;;  %713 = vmatprep.mubr.bf16.mxu1 %v1042_v38  ;;  %v1273_v58 = vld [vmem:[%s1654_s3 + $0x28] sm:$0xff] (!%p1075_p7)  }
  0x47   : > { %1124 = vmatpush3.bf16.msra.mxu1 %v1243_v12  ;;  %1103 = vmatprep.subr.bf16.mxu0 %v1244_v13  ;;  %v369_v33 = vld [vmem:[%s1529_s27] sm:$0xff]  ;;  %v1271_v56 = vld [vmem:[%s1654_s3 + $0x18] sm:$0xff] (!%p1075_p7)   ;;  %v1274_v62 = vld [vmem:[%s1654_s3 + $0x30] sm:$0xff] (!%p1075_p7)  }
  0x48   : > { %1125 = vmatprep.subr.bf16.mxu1 %v1245_v14  ;;  %v1039_v35 = vcombine.low %v369_v33, %v369_v33  ;;  %v1040_v36 = vcombine.high %v369_v33, %v369_v33  ;;  %v368_v47 = vld [vmem:[#allocation2] sm:$0xff]  ;;  %v1275_v0 = vld [vmem:[%s1654_s3 + $0x38] sm:$0xff] (!%p1075_p7)   ;;  %v1277_v3 = vld [vmem:[%s1658_s7 + $0x8] sm:$0xff] (!%p1075_p7)  }
  0x49   : > { %v1268_v52 = vld [vmem:[%s1654_s3] sm:$0xff] (!%p1075_p7)  }
  0x4a   : > { %1104 = vmatpush3.bf16.msra.mxu0 %v1246_v15  ;;  %673 = vmatprep.mubr.bf16.mxu0 %v1040_v36  ;;  %v1272_v57 = vld [vmem:[%s1654_s3 + $0x20] sm:$0xff] (!%p1075_p7)  }
  0x4b   : > { %1126 = vmatpush3.bf16.msra.mxu1 %v1247_v16  ;;  %1105 = vmatprep.subr.bf16.mxu0 %v1248_v17  ;;  %v1076_v60 = vld [vmem:[%s1653_s2] ss:$0 sm:$0xff] (!%p1075_p7) }
  0x4c   : > { %1127 = vmatprep.subr.bf16.mxu1 %v1249_v18  ;;  %v1276_v2 = vld [vmem:[%s1658_s7] sm:$0xff] (!%p1075_p7)  }
  0x4d   : > { %v1077_v4 = vld [vmem:[%s1655_s4] ss:$0 sm:$0xff] (!%p1075_p7) }
  0x4e   : > { %1106 = vmatpush3.bf16.msra.mxu0 %v1250_v19  ;;  %v1088_v38 = vld [vmem:[%s1659_s8] ss:$0 sm:$0xff] (!%p1075_p7) }
  0x4f   : > { %1128 = vmatpush3.bf16.msra.mxu1 %v1251_v20  ;;  %1107 = vmatprep.subr.bf16.mxu0 %v1252_v21 }
  0x50   : > { %1129 = vmatprep.subr.bf16.mxu1 %v1253_v22 }
  0x52   : > { %1108 = vmatpush3.bf16.msra.mxu0 %v1254_v23 }
  0x53   : > { %1130 = vmatpush3.bf16.msra.mxu1 %v1255_v24  ;;  %1109 = vmatprep.subr.bf16.mxu0 %v1256_v25 }
  0x54   : > { %1131 = vmatprep.subr.bf16.mxu1 %v1257_v26 }
  0x56   : > { %1110 = vmatpush3.bf16.msra.mxu0 %v1258_v27 }
  0x57   : > { %1132 = vmatpush3.bf16.msra.mxu1 %v1259_v28  ;;  %1111 = vmatprep.subr.bf16.mxu0 %v1260_v29 }
  0x58   : > { %1133 = vmatprep.subr.bf16.mxu1 %v1261_v30  ;;  %v1086_v30 = vld [vmem:[%s1656_s5] ss:$0 sm:$0xff] (!%p1075_p7) }
  0x5a   : > { %1112 = vmatpush3.bf16.msra.mxu0 %v1262_v31 }
  0x5b   : > { %1134 = vmatpush3.bf16.msra.mxu1 %v1263_v32  ;;  %1153 = vmatprep.subr.bf16.mxu0 (!%p1075_p7), %v1380_v53  ;;  %v1087_v32 = vld [vmem:[%s1657_s6] ss:$0 sm:$0xff] (!%p1075_p7) }
  0x5c   : > { %1173 = vmatprep.subr.bf16.mxu1 (!%p1075_p7), %v1380_v53 }
  0x5d   : > { %674 = vmatmul.mubr.bf16.vlgmr.msra.gmra.mrb[0].mxu0 %v1039_v35 }
  0x5e   : > { %714 = vmatmul.mubr.bf16.vlgmr.msra.gmra.mrb[0].mxu1 %v1041_v37  ;;  %1154 = vmatpush3.bf16.msra.mxu0 (!%p1075_p7), %v1268_v52 }
  0x5f   : > { %1169 = vmatprep.mubr.msk.bf16.mxu0 (!%p1075_p7), %vm1381_vm0, %v1380_v53  ;;  %1155 = vmatprep.subr.bf16.mxu0 (!%p1075_p7), %v1380_v53 }
  0x60   : > { %1177 = vmatprep.mubr.msk.bf16.mxu1 (!%p1075_p7), %vm1381_vm0, %v1380_v53  ;;  %1174 = vmatpush3.bf16.msra.mxu1 (!%p1075_p7), %v1276_v2 }
  0x61   : > { %1175 = vmatprep.subr.bf16.mxu1 (!%p1075_p7), %v1380_v53 }
  0x62   : > { %1156 = vmatpush3.bf16.msra.mxu0 (!%p1075_p7), %v1269_v54 }
  0x63   : > { %1157 = vmatprep.subr.bf16.mxu0 (!%p1075_p7), %v1380_v53 }
  0x64   : > { %1176 = vmatpush3.bf16.msra.mxu1 (!%p1075_p7), %v1277_v3 }
  0x66   : > { %1158 = vmatpush3.bf16.msra.mxu0 (!%p1075_p7), %v1270_v55 }
  0x67   : > { %1159 = vmatprep.subr.bf16.mxu0 (!%p1075_p7), %v1380_v53 }
  0x6a   : > { %1160 = vmatpush3.bf16.msra.mxu0 (!%p1075_p7), %v1271_v56 }
  0x6b   : > { %1161 = vmatprep.subr.bf16.mxu0 (!%p1075_p7), %v1380_v53 }
  0x6e   : > { %1162 = vmatpush3.bf16.msra.mxu0 (!%p1075_p7), %v1272_v57 }
  0x6f   : > { %1163 = vmatprep.subr.bf16.mxu0 (!%p1075_p7), %v1380_v53 }
  0x72   : > { %1164 = vmatpush3.bf16.msra.mxu0 (!%p1075_p7), %v1273_v58 }
  0x73   : > { %1165 = vmatprep.subr.bf16.mxu0 (!%p1075_p7), %v1380_v53 }
  0x76   : > { %1166 = vmatpush3.bf16.msra.mxu0 (!%p1075_p7), %v1274_v62 }
  0x77   : > { %1167 = vmatprep.subr.bf16.mxu0 (!%p1075_p7), %v1380_v53 }
  0x7a   : > { %1168 = vmatpush3.bf16.msra.mxu0 (!%p1075_p7), %v1275_v0 }
 0x130   : > { %v1113_v39 = vpop.f32.mrb[0].mxu0 }
 0x131   : > { %v1135_v40 = vpop.f32.mrb[0].mxu1  ;;  %v1114_v41 = vpop.f32.mrb[1].mxu0 }
 0x132   : > { %v1136_v42 = vpop.f32.mrb[1].mxu1  ;;  %v1115_v43 = vadd.f32 %v1114_v41, %v1113_v39  ;;  %v1116_v45 = vpop.f32.mrb[2].mxu0 }
 0x133   : > { %v1137_v44 = vadd.f32 %v1136_v42, %v1135_v40  ;;  %v1138_v46 = vpop.f32.mrb[2].mxu1  ;;  %v1117_v48 = vpop.f32.mrb[3].mxu0  ;;  %726 = sbr.rel (%p1075_p7) target bundleno = 814 (0x32e), region = 68 }
 0x134   : > { %v1139_v49 = vpop.f32.mrb[3].mxu1 }
 0x135   : > { %v716_v50 = vadd.f32 %v1137_v44, %v1115_v43 }
 0x137   : > { %v721_v51 = vadd.f32 %v716_v50, %v368_v47 }
 0x139   : > { %722 = vst [vmem:[#allocation2] sm:$0xff] %v721_v51 }
 0x140   : > { %v727_v59 = vld [vmem:[#allocation2] sm:$0xff] }
 0x141   : > { %v735_v61 = vadd.f32 %v1076_v60, %v727_v59 }
 0x143   : > { %v736_v63 = vmax.f32 %v735_v61, 0.0 }
 0x145   : > { %v737_v1 = vpack.c.bf16 %v736_v63, %v736_v63 }
 0x147   : > { %1170 = vmatmul.mubr.bf16.vlgmr.msra.gmra.mrb[0].mxu0 %v737_v1 }
 0x21a   : > { %v843_v5 = vpop.f32.mrb[0].mxu0 }
 0x21b   : > { %v844_v6 = vadd.f32 %v1077_v4, %v843_v5  ;;  %v1171_v7 = vpop.f32.mrb[1].mxu0 }
 0x21c   : > { %v846_v8 = vpop.f32.mrb[2].mxu0 }
 0x21d   : > { %v850_v9 = vsel %vm849_vm1, %v844_v6, 0.0  ;;  %v1172_v10 = vpop.f32.mrb[3].mxu0 }
 0x21e   : > { %v851_v11 = vrot.slane %v850_v9, 4 }
 0x220   : > { %v852_v12 = vadd.f32 %v851_v11, %v850_v9 }
 0x222   : > { %v853_v13 = vrot.slane %v852_v12, 2 }
 0x224   : > { %v854_v14 = vadd.f32 %v853_v13, %v852_v12 }
 0x226   : > { %v855_v15 = vrot.slane %v854_v14, 1 }
 0x228   : > { %v856_v16 = vadd.f32 %v855_v15, %v854_v14 }
 0x22a   : > { %v858_v17 = vmul.f32 0.125, %v856_v16 }
 0x22c   : > { %v859_v18 = vsub.f32 %v844_v6, %v858_v17 }
 0x22e   : > { %v860_v19 = vmul.f32 %v859_v18, %v859_v18 }
 0x230   : > { %v861_v20 = vsel %vm849_vm1, %v860_v19, 0.0 }
 0x231   : > { %v862_v21 = vrot.slane %v861_v20, 4 }
 0x233   : > { %v863_v22 = vadd.f32 %v862_v21, %v861_v20 }
 0x235   : > { %v864_v23 = vrot.slane %v863_v22, 2 }
 0x237   : > { %v865_v24 = vadd.f32 %v864_v23, %v863_v22 }
 0x239   : > { %v866_v25 = vrot.slane %v865_v24, 1 }
 0x23b   : > { %v867_v26 = vadd.f32 %v866_v25, %v865_v24 }
 0x23d   : > { %v868_v27 = vmul.f32 0.125, %v867_v26 }
 0x23f   : > { %v869_v28 = vadd.f32 1e-05, %v868_v27 }
 0x241   : > { %1278 = vrsqrt.f32 %v869_v28 }
 0x24b   : > { %v1279_v29 = vpop.eup %1278 }
 0x24c   : > { %v871_v31 = vmul.f32 %v1279_v29, %v859_v18 }
 0x24e   : > { %v879_v33 = vmul.f32 %v1086_v30, %v871_v31 }
 0x250   : > { %v887_v34 = vadd.f32 %v1087_v32, %v879_v33 }
 0x252   : > { %vm888_vm2 = vcmp.ge.f32.partialorder %v887_v34, 0.0  ;;  %v889_v35 = vmul.f32 0.01, %v887_v34 }
 0x254   : > { %v890_v36 = vsel %vm888_vm2, %v887_v34, %v889_v35 }
 0x255   : > { %v891_v37 = vpack.c.bf16 %v890_v36, %v890_v36 }
 0x257   : > { %1178 = vmatmul.mubr.msk.bf16.vlgmr.msra.gmra.mrb[0].mxu1 %vm849_vm1, %v891_v37 }
 0x32a   : > { %v952_v39 = vpop.f32.mrb[0].mxu1 }
 0x32b   : > { %v953_v40 = vadd.f32 %v1088_v38, %v952_v39  ;;  %v1179_v41 = vpop.f32.mrb[1].mxu1 }
 0x32c   : > { %v955_v42 = vpop.f32.mrb[2].mxu1 }
 0x32d   : > { %958 = vst [vmem:[#allocation6] sm:$0xff] %v953_v40  ;;  %v1180_v43 = vpop.f32.mrb[3].mxu1 }
 0x32e PF: > { %p1192_p4 = scmp.eq.s32.totalorder %s1452_s13, 1  ;;  %s1382_s26 = smov [#allocation6]  }
 0x32f   : > { %s966_s27 = sshll.u32 %s1382_s26, 4  ;;  %s967_s27 = int_to_ptr.vmem [resolvable:$true] %s966_s27 }
 0x330   : > { %s1310_s18 = scalar_lea.vmem %s967_s27, 128  ;;  %p1317_p12 = scmp.lt.s32.totalorder %s967_s27, %s967_s27 }
 0x331   : > { %p1311_p5 = scmp.ne.s32.totalorder %s967_s27, %s1310_s18  ;;  %p1318_p0 = scmp.lt.s32.totalorder %s1310_s18, %s1310_s18 }
 0x333   : > { %p1312_p6 = pnand %p1311_p5, %p1192_p4  ;;  %p1319_p1 = por %p1318_p0, %p1317_p12 }
 0x335   : > { %p1313_p10 = pneg %p1312_p6 }
 0x337   : > { %p1320_p2 = pnand %p1319_p1, %p1313_p10 }
 0x339   : > { %1323 = shalt.err (!%p1320_p2)
}
 0x33a   : > { %s1324_s23 = scalar_lea.hbm %s1660_s9, 128 }
 0x33b   : > { %p1325_p11 = scmp.ne.s32.totalorder %s1660_s9, %s1324_s23  ;;  %p1330_p9 = scmp.lt.u32.totalorder %s1324_s23, %s1660_s9 }
 0x33d   : > { %p1326_p13 = pnand %p1325_p11, %p1192_p4 }
 0x33f   : > { %p1327_p3 = pneg %p1326_p13 }
 0x341   : > { %p1332_p8 = pnand %p1330_p9, %p1327_p3 }
 0x343   : > { %1335 = shalt.err (!%p1332_p8)
}
 0x344   : > { %1184 = dma.vmem_to_hbm [thread:$0]  (%p1192_p4), %s967_s27, 128, %s1660_s9, [#allocation5]  }
 0x345   : > { %1357 = dma.done.wait (%p1192_p4), [#allocation5], 128  }
 0x346   : > { %1359 = vsyncadd (%p1192_p4), [#allocation5], 4294967168 }
 0x347 PF: > { %p20_p7 = scmp.ge.s32.totalorder %s1455_s14, 4   ;;  %s1664_s30 = smov %s1366_s10 }
 0x348   : > { %s1665_s10 = smov %s1370_s11  ;;  %s1666_s11 = smov %s1465_s17 }
 0x349   : > { %s1667_s12 = smov %s1455_s14  ;;  %22 = sbr.rel (!%p20_p7) target bundleno = 4 (0x4), region = 104 }
 0x350   :  { %979 = vsyncpa [#allocation4], 1 }
 0x351   :  { %981 = vsyncpa [#allocation4 + $0x1], 1 }
 0x352   :  { %982 = vsyncpa [#allocation5], 1 }
 0x353   :  { %984 = vsyncpa [#allocation5 + $0x1], 1 }

</bundles_post_ra>
